<compile_context>
chip_gen: v7x
topology: tpu7x:2x2x1
jax: 0.10.0
libtpu: 0.0.40
codegen_flags: <defaults>
</compile_context>

<pallas_src>
import functools

import jax
import jax.numpy as jnp
from jax.experimental import pallas as pl
from jax.experimental.pallas import tpu as pltpu

SLOPE = 0.01


def _depthconv_kernel(x_ref, w1_ref, b1_ref, dweff_ref, dwb_ref,
                      wcat_ref, bout_ref, o_ref, *, W, add_identity):
    # Block shapes (P = H*W, lane-dense last axis):
    #   x_ref : (Nb, Cin,  P)          o_ref : (Nb, Cout, P)
    #   w1    : (Cin, Cin, P)          b1    : (Cin, P)
    #   dweff : (9, Cin, P)  taps with edge masks pre-folded (k = dh*3 + dw)
    #   dwb   : (Cin, P)
    #   wcat  : (K, Cout, P)  K = 2*Cin ([w2 ; wa]) or Cin (w2 only)
    #   bout  : (Cout, P)     b2 + ba (or just b2)
    Nb, Cin, P = x_ref.shape

    x = x_ref[...]                                     # (Nb, Cin, P)

    # --- conv1: 1x1 conv + LeakyReLU (unrolled VPU broadcast-MACs) ----------
    y1 = b1_ref[...] + x[:, 0:1, :] * w1_ref[0]        # bias folded into init
    for c in range(1, Cin):
        y1 = y1 + x[:, c:c + 1, :] * w1_ref[c]
    y1 = jnp.maximum(y1, SLOPE * y1)                   # LeakyReLU, 2 VPU ops

    # --- depth_conv: 3x3 depthwise, padding=1, kept in vregs via lane rolls -
    # Edge ("padding=1") handling lives entirely in the pre-masked taps.
    acc = dwb_ref[...] + y1 * dweff_ref[4]             # center tap (sh=sw=0)
    for sh in (-1, 0, 1):
        for sw in (-1, 0, 1):
            if sh == 0 and sw == 0:
                continue
            k = (sh + 1) * 3 + (sw + 1)
            delta = sh * W + sw                        # flattened spatial shift
            win = pltpu.roll(y1, shift=(-delta) % P, axis=2)  # win[p] = y1[p+delta]
            acc = acc + win * dweff_ref[k]

    # --- conv2 (+ fused adaptor 1x1) -----------------------------------------
    K = wcat_ref.shape[0]
    out = bout_ref[...] + acc[:, 0:1, :] * wcat_ref[0]
    for k in range(1, K):
        src = acc if k < Cin else x                    # rows [w2 ; wa]
        c = k if k < Cin else k - Cin
        out = out + src[:, c:c + 1, :] * wcat_ref[k]
    if add_identity:                                   # in_ch == out_ch path
        out = out + x

    o_ref[...] = out                                   # lane-dense store


def _pick_batch_block(n, per_image_bytes, target_bytes=2 << 20,
                      vmem_budget=40 << 20):
    """Images per grid step.

    Targets ~target_bytes of x+out per step, clamps so the per-step VMEM
    footprint (2x pipeline buffers for x/out plus live x/y1/roll/acc/out
    values) stays inside a v7x-safe budget, and keeps >= 2 grid steps when N
    allows so both v7x TensorCores get work.  The caller pads N, so no exact
    divisibility is required (no silent collapse to Nb=1 for awkward N).
    """
    nb_vmem = max(1, vmem_budget // max(1, 8 * per_image_bytes))
    nb = max(1, min(n, max(1, target_bytes // max(1, per_image_bytes)), nb_vmem))
    while nb > 1 and (n + nb - 1) // nb < 2:
        nb -= 1
    return int(nb)


def depthconv_forward(x_nchw, params):
    """x_nchw: (N, Cin, H, W) float32 -> (N, Cout, H, W) float32."""
    w1, b1, dww, dwb, w2, b2, wa, ba = params
    N, Cin, H, W = x_nchw.shape
    Cout = w2.shape[1]
    P = H * W
    has_adaptor = wa is not None
    f32 = jnp.float32

    # ---- wrapper-side weight prep (all lane-pre-broadcast to width P) -------
    w1k = jnp.broadcast_to(w1.astype(f32)[:, :, None], (Cin, Cin, P))
    b1k = jnp.broadcast_to(b1.astype(f32)[:, None], (Cin, P))
    dwbk = jnp.broadcast_to(dwb.astype(f32)[:, None], (Cin, P))

    # Fold the 3x3 "padding=1" edge masks directly into the taps:
    # dw_eff[k, c, p] = dww[k, c] * valid(p, k), with k = (sh+1)*3 + (sw+1).
    pidx = jnp.arange(P, dtype=jnp.int32)
    row = pidx // W
    col = pidx % W
    planes = []
    for sh in (-1, 0, 1):
        for sw in (-1, 0, 1):
            valid = ((row + sh >= 0) & (row + sh <= H - 1) &
                     (col + sw >= 0) & (col + sw <= W - 1)).astype(f32)   # (P,)
            planes.append(dww[(sh + 1) * 3 + (sw + 1)].astype(f32)[:, None]
                          * valid[None, :])                               # (Cin, P)
    dweff = jnp.stack(planes, axis=0)                                     # (9, Cin, P)

    if has_adaptor:
        wcat2 = jnp.concatenate([w2, wa], axis=0).astype(f32)   # (2*Cin, Cout)
        bout1 = (b2 + ba).astype(f32)
    else:
        wcat2 = w2.astype(f32)
        bout1 = b2.astype(f32)
    K = wcat2.shape[0]
    wcatk = jnp.broadcast_to(wcat2[:, :, None], (K, Cout, P))
    boutk = jnp.broadcast_to(bout1[:, None], (Cout, P))

    x3 = x_nchw.astype(f32).reshape(N, Cin, P)          # free reshape, stays NCHW

    # ---- block / grid selection ----------------------------------------------
    per_image_bytes = (Cin + Cout) * P * 4
    Nb = _pick_batch_block(N, per_image_bytes)
    Np = ((N + Nb - 1) // Nb) * Nb
    if Np != N:                                          # pad batch, slice output
        x3 = jnp.pad(x3, ((0, Np - N), (0, 0), (0, 0)))
    grid = (Np // Nb,)

    x_blk = Nb * Cin * P * 4
    o_blk = Nb * Cout * P * 4
    w_bytes = 4 * int(w1k.size + b1k.size + dweff.size + dwbk.size
                      + wcatk.size + boutk.size)
    # 2x double-buffered pipeline blocks + live in-kernel values
    # (x, y1, roll temp, acc, out) + resident weights + slack; capped with
    # headroom for v7x's 64 MiB physical VMEM.
    need = 2 * (x_blk + o_blk) + 4 * x_blk + 2 * o_blk + 2 * w_bytes + (2 << 20)
    vmem_limit = int(min(48 << 20, max(8 << 20, need)))

    full = lambda a: pl.BlockSpec(a.shape, lambda g: (0,) * a.ndim)
    kernel = functools.partial(_depthconv_kernel, W=W,
                               add_identity=not has_adaptor)

    grid_spec = pltpu.PrefetchScalarGridSpec(
        num_scalar_prefetch=0,
        grid=grid,
        in_specs=[
            pl.BlockSpec((Nb, Cin, P), lambda g: (g, 0, 0)),
            full(w1k), full(b1k), full(dweff), full(dwbk),
            full(wcatk), full(boutk),
        ],
        out_specs=pl.BlockSpec((Nb, Cout, P), lambda g: (g, 0, 0)),
    )

    out3 = pl.pallas_call(
        kernel,
        out_shape=jax.ShapeDtypeStruct((Np, Cout, P), f32),
        grid_spec=grid_spec,
        compiler_params=pltpu.CompilerParams(
            dimension_semantics=("parallel",),   # batch axis carries no state
            vmem_limit_bytes=vmem_limit),
    )(x3, w1k, b1k, dweff, dwbk, wcatk, boutk)

    return out3[:N].reshape(N, Cout, H, W)


def make_params(key, in_ch, out_ch):
    ks = jax.random.split(key, 8)
    s = 0.1
    w1 = s * jax.random.normal(ks[0], (in_ch, in_ch), jnp.float32)   # [in, out]
    b1 = s * jax.random.normal(ks[1], (in_ch,), jnp.float32)
    dww = s * jax.random.normal(ks[2], (9, in_ch), jnp.float32)      # 3x3 taps, k = dh*3+dw
    dwb = s * jax.random.normal(ks[3], (in_ch,), jnp.float32)
    w2 = s * jax.random.normal(ks[4], (in_ch, out_ch), jnp.float32)  # [in, out]
    b2 = s * jax.random.normal(ks[5], (out_ch,), jnp.float32)
    if in_ch != out_ch:
        wa = s * jax.random.normal(ks[6], (in_ch, out_ch), jnp.float32)
        ba = s * jax.random.normal(ks[7], (out_ch,), jnp.float32)
    else:
        wa, ba = None, None                                          # no adaptor
    return (w1, b1, dww, dwb, w2, b2, wa, ba)


def ref_forward(x_nchw, params):
    """Pure-JAX reference matching the PyTorch module semantics (NCHW)."""
    w1, b1, dww, dwb, w2, b2, wa, ba = params
    N, Cin, H, W = x_nchw.shape
    y1 = jnp.einsum('nchw,cd->ndhw', x_nchw, w1) + b1[None, :, None, None]
    y1 = jnp.where(y1 >= 0, y1, SLOPE * y1)
    yp = jnp.pad(y1, ((0, 0), (0, 0), (1, 1), (1, 1)))
    acc = jnp.zeros_like(y1)
    for dh in range(3):
        for dw in range(3):
            k = dh * 3 + dw
            acc = acc + yp[:, :, dh:dh + H, dw:dw + W] * dww[k][None, :, None, None]
    acc = acc + dwb[None, :, None, None]
    z = jnp.einsum('nchw,cd->ndhw', acc, w2) + b2[None, :, None, None]
    if wa is not None:
        ident = jnp.einsum('nchw,cd->ndhw', x_nchw, wa) + ba[None, :, None, None]
    else:
        ident = x_nchw
    return z + ident


if __name__ == "__main__":
    key = jax.random.PRNGKey(0)
    kx, kp = jax.random.split(key)

    N, Cin, Cout, H, W = 2, 4, 8, 16, 16            # x (NCHW): (2, 4, 16, 16)
    x = jax.random.normal(kx, (N, Cin, H, W), jnp.float32)
    params = make_params(kp, Cin, Cout)

    out = depthconv_forward(x, params)
    out = jax.block_until_ready(out)
    ref = ref_forward(x, params)
    assert out.shape == (N, Cout, H, W)
    assert jnp.allclose(out, ref, atol=1e-5, rtol=1e-5), "mismatch vs reference"

    # Also exercise the in_ch == out_ch branch (module has no adaptor there).
    params_same = make_params(jax.random.PRNGKey(1), Cin, Cin)
    out_same = jax.block_until_ready(depthconv_forward(x, params_same))
    ref_same = ref_forward(x, params_same)
    assert jnp.allclose(out_same, ref_same, atol=1e-5, rtol=1e-5), \
        "mismatch vs reference (no-adaptor path)"

    print("KERNEL_OK")
</pallas_src>

<mosaic_0001>
module attributes {stable_mosaic.version = 11 : i64} {
  func.func @_depthconv_kernel(%arg0: i32, %arg1: memref<1x4x256xf32, #tpu.memory_space<vmem>>, %arg2: memref<4x4x256xf32, #tpu.memory_space<vmem>>, %arg3: memref<4x256xf32, #tpu.memory_space<vmem>>, %arg4: memref<9x4x256xf32, #tpu.memory_space<vmem>>, %arg5: memref<4x256xf32, #tpu.memory_space<vmem>>, %arg6: memref<8x8x256xf32, #tpu.memory_space<vmem>>, %arg7: memref<8x256xf32, #tpu.memory_space<vmem>>, %arg8: memref<1x8x256xf32, #tpu.memory_space<vmem>>) attributes {dimension_semantics = [#tpu.dimension_semantics<parallel>], iteration_bounds = array<i64: 2>, scalar_prefetch = 0 : i64, scratch_operands = 0 : i64, tpu.core_type = #tpu.core_type<tc>, window_params = [{transform_indices = @transform_0, window_bounds = array<i64: 1, 4, 256>}, {pipeline_mode = #tpu.pipeline_mode<synchronous>, transform_indices = @transform_1, window_bounds = array<i64: 4, 4, 256>}, {pipeline_mode = #tpu.pipeline_mode<synchronous>, transform_indices = @transform_2, window_bounds = array<i64: 4, 256>}, {pipeline_mode = #tpu.pipeline_mode<synchronous>, transform_indices = @transform_3, window_bounds = array<i64: 9, 4, 256>}, {pipeline_mode = #tpu.pipeline_mode<synchronous>, transform_indices = @transform_4, window_bounds = array<i64: 4, 256>}, {pipeline_mode = #tpu.pipeline_mode<synchronous>, transform_indices = @transform_5, window_bounds = array<i64: 8, 8, 256>}, {pipeline_mode = #tpu.pipeline_mode<synchronous>, transform_indices = @transform_6, window_bounds = array<i64: 8, 256>}, {transform_indices = @transform_7, window_bounds = array<i64: 1, 8, 256>}]} {
    %c0 = arith.constant 0 : index
    %c0_0 = arith.constant 0 : index
    %c0_1 = arith.constant 0 : index
    %0 = vector.load %arg1[%c0, %c0_0, %c0_1] : memref<1x4x256xf32, #tpu.memory_space<vmem>>, vector<1x4x256xf32>
    %c0_2 = arith.constant 0 : index
    %c0_3 = arith.constant 0 : index
    %1 = vector.load %arg3[%c0_2, %c0_3] : memref<4x256xf32, #tpu.memory_space<vmem>>, vector<4x256xf32>
    %2 = vector.extract_strided_slice %0 {offsets = [0, 0, 0], sizes = [1, 1, 256], strides = [1, 1, 1]} : vector<1x4x256xf32> to vector<1x1x256xf32>
    %c0_4 = arith.constant 0 : index
    %c0_5 = arith.constant 0 : index
    %c0_6 = arith.constant 0 : index
    %3 = vector.load %arg2[%c0_4, %c0_5, %c0_6] : memref<4x4x256xf32, #tpu.memory_space<vmem>>, vector<1x4x256xf32>
    %4 = vector.shape_cast %3 : vector<1x4x256xf32> to vector<4x256xf32>
    %5 = vector.shape_cast %4 : vector<4x256xf32> to vector<1x4x256xf32>
    %6 = vector.broadcast %2 : vector<1x1x256xf32> to vector<1x4x256xf32>
    %7 = arith.mulf %6, %5 : vector<1x4x256xf32>
    %8 = vector.shape_cast %1 : vector<4x256xf32> to vector<1x4x256xf32>
    %9 = arith.addf %8, %7 : vector<1x4x256xf32>
    %10 = vector.extract_strided_slice %0 {offsets = [0, 1, 0], sizes = [1, 1, 256], strides = [1, 1, 1]} : vector<1x4x256xf32> to vector<1x1x256xf32>
    %c1 = arith.constant 1 : index
    %c0_7 = arith.constant 0 : index
    %c0_8 = arith.constant 0 : index
    %11 = vector.load %arg2[%c1, %c0_7, %c0_8] : memref<4x4x256xf32, #tpu.memory_space<vmem>>, vector<1x4x256xf32>
    %12 = vector.shape_cast %11 : vector<1x4x256xf32> to vector<4x256xf32>
    %13 = vector.shape_cast %12 : vector<4x256xf32> to vector<1x4x256xf32>
    %14 = vector.broadcast %10 : vector<1x1x256xf32> to vector<1x4x256xf32>
    %15 = arith.mulf %14, %13 : vector<1x4x256xf32>
    %16 = arith.addf %9, %15 : vector<1x4x256xf32>
    %17 = vector.extract_strided_slice %0 {offsets = [0, 2, 0], sizes = [1, 1, 256], strides = [1, 1, 1]} : vector<1x4x256xf32> to vector<1x1x256xf32>
    %c2 = arith.constant 2 : index
    %c0_9 = arith.constant 0 : index
    %c0_10 = arith.constant 0 : index
    %18 = vector.load %arg2[%c2, %c0_9, %c0_10] : memref<4x4x256xf32, #tpu.memory_space<vmem>>, vector<1x4x256xf32>
    %19 = vector.shape_cast %18 : vector<1x4x256xf32> to vector<4x256xf32>
    %20 = vector.shape_cast %19 : vector<4x256xf32> to vector<1x4x256xf32>
    %21 = vector.broadcast %17 : vector<1x1x256xf32> to vector<1x4x256xf32>
    %22 = arith.mulf %21, %20 : vector<1x4x256xf32>
    %23 = arith.addf %16, %22 : vector<1x4x256xf32>
    %24 = vector.extract_strided_slice %0 {offsets = [0, 3, 0], sizes = [1, 1, 256], strides = [1, 1, 1]} : vector<1x4x256xf32> to vector<1x1x256xf32>
    %c3 = arith.constant 3 : index
    %c0_11 = arith.constant 0 : index
    %c0_12 = arith.constant 0 : index
    %25 = vector.load %arg2[%c3, %c0_11, %c0_12] : memref<4x4x256xf32, #tpu.memory_space<vmem>>, vector<1x4x256xf32>
    %26 = vector.shape_cast %25 : vector<1x4x256xf32> to vector<4x256xf32>
    %27 = vector.shape_cast %26 : vector<4x256xf32> to vector<1x4x256xf32>
    %28 = vector.broadcast %24 : vector<1x1x256xf32> to vector<1x4x256xf32>
    %29 = arith.mulf %28, %27 : vector<1x4x256xf32>
    %30 = arith.addf %23, %29 : vector<1x4x256xf32>
    %cst = arith.constant 0.00999999977 : f32
    %31 = vector.broadcast %cst : f32 to vector<1x4x256xf32>
    %32 = arith.mulf %31, %30 : vector<1x4x256xf32>
    %33 = arith.maximumf %30, %32 : vector<1x4x256xf32>
    %c0_13 = arith.constant 0 : index
    %c0_14 = arith.constant 0 : index
    %34 = vector.load %arg5[%c0_13, %c0_14] : memref<4x256xf32, #tpu.memory_space<vmem>>, vector<4x256xf32>
    %c4 = arith.constant 4 : index
    %c0_15 = arith.constant 0 : index
    %c0_16 = arith.constant 0 : index
    %35 = vector.load %arg4[%c4, %c0_15, %c0_16] : memref<9x4x256xf32, #tpu.memory_space<vmem>>, vector<1x4x256xf32>
    %36 = vector.shape_cast %35 : vector<1x4x256xf32> to vector<4x256xf32>
    %37 = vector.shape_cast %36 : vector<4x256xf32> to vector<1x4x256xf32>
    %38 = arith.mulf %33, %37 : vector<1x4x256xf32>
    %39 = vector.shape_cast %34 : vector<4x256xf32> to vector<1x4x256xf32>
    %40 = arith.addf %39, %38 : vector<1x4x256xf32>
    %c17_i32 = arith.constant 17 : i32
    %41 = tpu.dynamic_rotate %33 by %c17_i32 dim 2 : vector<1x4x256xf32>, i32 -> vector<1x4x256xf32>
    %c0_17 = arith.constant 0 : index
    %c0_18 = arith.constant 0 : index
    %c0_19 = arith.constant 0 : index
    %42 = vector.load %arg4[%c0_17, %c0_18, %c0_19] : memref<9x4x256xf32, #tpu.memory_space<vmem>>, vector<1x4x256xf32>
    %43 = vector.shape_cast %42 : vector<1x4x256xf32> to vector<4x256xf32>
    %44 = vector.shape_cast %43 : vector<4x256xf32> to vector<1x4x256xf32>
    %45 = arith.mulf %41, %44 : vector<1x4x256xf32>
    %46 = arith.addf %40, %45 : vector<1x4x256xf32>
    %c16_i32 = arith.constant 16 : i32
    %47 = tpu.dynamic_rotate %33 by %c16_i32 dim 2 : vector<1x4x256xf32>, i32 -> vector<1x4x256xf32>
    %c1_20 = arith.constant 1 : index
    %c0_21 = arith.constant 0 : index
    %c0_22 = arith.constant 0 : index
    %48 = vector.load %arg4[%c1_20, %c0_21, %c0_22] : memref<9x4x256xf32, #tpu.memory_space<vmem>>, vector<1x4x256xf32>
    %49 = vector.shape_cast %48 : vector<1x4x256xf32> to vector<4x256xf32>
    %50 = vector.shape_cast %49 : vector<4x256xf32> to vector<1x4x256xf32>
    %51 = arith.mulf %47, %50 : vector<1x4x256xf32>
    %52 = arith.addf %46, %51 : vector<1x4x256xf32>
    %c15_i32 = arith.constant 15 : i32
    %53 = tpu.dynamic_rotate %33 by %c15_i32 dim 2 : vector<1x4x256xf32>, i32 -> vector<1x4x256xf32>
    %c2_23 = arith.constant 2 : index
    %c0_24 = arith.constant 0 : index
    %c0_25 = arith.constant 0 : index
    %54 = vector.load %arg4[%c2_23, %c0_24, %c0_25] : memref<9x4x256xf32, #tpu.memory_space<vmem>>, vector<1x4x256xf32>
    %55 = vector.shape_cast %54 : vector<1x4x256xf32> to vector<4x256xf32>
    %56 = vector.shape_cast %55 : vector<4x256xf32> to vector<1x4x256xf32>
    %57 = arith.mulf %53, %56 : vector<1x4x256xf32>
    %58 = arith.addf %52, %57 : vector<1x4x256xf32>
    %c1_i32 = arith.constant 1 : i32
    %59 = tpu.dynamic_rotate %33 by %c1_i32 dim 2 : vector<1x4x256xf32>, i32 -> vector<1x4x256xf32>
    %c3_26 = arith.constant 3 : index
    %c0_27 = arith.constant 0 : index
    %c0_28 = arith.constant 0 : index
    %60 = vector.load %arg4[%c3_26, %c0_27, %c0_28] : memref<9x4x256xf32, #tpu.memory_space<vmem>>, vector<1x4x256xf32>
    %61 = vector.shape_cast %60 : vector<1x4x256xf32> to vector<4x256xf32>
    %62 = vector.shape_cast %61 : vector<4x256xf32> to vector<1x4x256xf32>
    %63 = arith.mulf %59, %62 : vector<1x4x256xf32>
    %64 = arith.addf %58, %63 : vector<1x4x256xf32>
    %c255_i32 = arith.constant 255 : i32
    %65 = tpu.dynamic_rotate %33 by %c255_i32 dim 2 : vector<1x4x256xf32>, i32 -> vector<1x4x256xf32>
    %c5 = arith.constant 5 : index
    %c0_29 = arith.constant 0 : index
    %c0_30 = arith.constant 0 : index
    %66 = vector.load %arg4[%c5, %c0_29, %c0_30] : memref<9x4x256xf32, #tpu.memory_space<vmem>>, vector<1x4x256xf32>
    %67 = vector.shape_cast %66 : vector<1x4x256xf32> to vector<4x256xf32>
    %68 = vector.shape_cast %67 : vector<4x256xf32> to vector<1x4x256xf32>
    %69 = arith.mulf %65, %68 : vector<1x4x256xf32>
    %70 = arith.addf %64, %69 : vector<1x4x256xf32>
    %c241_i32 = arith.constant 241 : i32
    %71 = tpu.dynamic_rotate %33 by %c241_i32 dim 2 : vector<1x4x256xf32>, i32 -> vector<1x4x256xf32>
    %c6 = arith.constant 6 : index
    %c0_31 = arith.constant 0 : index
    %c0_32 = arith.constant 0 : index
    %72 = vector.load %arg4[%c6, %c0_31, %c0_32] : memref<9x4x256xf32, #tpu.memory_space<vmem>>, vector<1x4x256xf32>
    %73 = vector.shape_cast %72 : vector<1x4x256xf32> to vector<4x256xf32>
    %74 = vector.shape_cast %73 : vector<4x256xf32> to vector<1x4x256xf32>
    %75 = arith.mulf %71, %74 : vector<1x4x256xf32>
    %76 = arith.addf %70, %75 : vector<1x4x256xf32>
    %c240_i32 = arith.constant 240 : i32
    %77 = tpu.dynamic_rotate %33 by %c240_i32 dim 2 : vector<1x4x256xf32>, i32 -> vector<1x4x256xf32>
    %c7 = arith.constant 7 : index
    %c0_33 = arith.constant 0 : index
    %c0_34 = arith.constant 0 : index
    %78 = vector.load %arg4[%c7, %c0_33, %c0_34] : memref<9x4x256xf32, #tpu.memory_space<vmem>>, vector<1x4x256xf32>
    %79 = vector.shape_cast %78 : vector<1x4x256xf32> to vector<4x256xf32>
    %80 = vector.shape_cast %79 : vector<4x256xf32> to vector<1x4x256xf32>
    %81 = arith.mulf %77, %80 : vector<1x4x256xf32>
    %82 = arith.addf %76, %81 : vector<1x4x256xf32>
    %c239_i32 = arith.constant 239 : i32
    %83 = tpu.dynamic_rotate %33 by %c239_i32 dim 2 : vector<1x4x256xf32>, i32 -> vector<1x4x256xf32>
    %c8 = arith.constant 8 : index
    %c0_35 = arith.constant 0 : index
    %c0_36 = arith.constant 0 : index
    %84 = vector.load %arg4[%c8, %c0_35, %c0_36] : memref<9x4x256xf32, #tpu.memory_space<vmem>>, vector<1x4x256xf32>
    %85 = vector.shape_cast %84 : vector<1x4x256xf32> to vector<4x256xf32>
    %86 = vector.shape_cast %85 : vector<4x256xf32> to vector<1x4x256xf32>
    %87 = arith.mulf %83, %86 : vector<1x4x256xf32>
    %88 = arith.addf %82, %87 : vector<1x4x256xf32>
    %c0_37 = arith.constant 0 : index
    %c0_38 = arith.constant 0 : index
    %89 = vector.load %arg7[%c0_37, %c0_38] : memref<8x256xf32, #tpu.memory_space<vmem>>, vector<8x256xf32>
    %90 = vector.extract_strided_slice %88 {offsets = [0, 0, 0], sizes = [1, 1, 256], strides = [1, 1, 1]} : vector<1x4x256xf32> to vector<1x1x256xf32>
    %c0_39 = arith.constant 0 : index
    %c0_40 = arith.constant 0 : index
    %c0_41 = arith.constant 0 : index
    %91 = vector.load %arg6[%c0_39, %c0_40, %c0_41] : memref<8x8x256xf32, #tpu.memory_space<vmem>>, vector<1x8x256xf32>
    %92 = vector.shape_cast %91 : vector<1x8x256xf32> to vector<8x256xf32>
    %93 = vector.shape_cast %92 : vector<8x256xf32> to vector<1x8x256xf32>
    %94 = vector.broadcast %90 : vector<1x1x256xf32> to vector<1x8x256xf32>
    %95 = arith.mulf %94, %93 : vector<1x8x256xf32>
    %96 = vector.shape_cast %89 : vector<8x256xf32> to vector<1x8x256xf32>
    %97 = arith.addf %96, %95 : vector<1x8x256xf32>
    %98 = vector.extract_strided_slice %88 {offsets = [0, 1, 0], sizes = [1, 1, 256], strides = [1, 1, 1]} : vector<1x4x256xf32> to vector<1x1x256xf32>
    %c1_42 = arith.constant 1 : index
    %c0_43 = arith.constant 0 : index
    %c0_44 = arith.constant 0 : index
    %99 = vector.load %arg6[%c1_42, %c0_43, %c0_44] : memref<8x8x256xf32, #tpu.memory_space<vmem>>, vector<1x8x256xf32>
    %100 = vector.shape_cast %99 : vector<1x8x256xf32> to vector<8x256xf32>
    %101 = vector.shape_cast %100 : vector<8x256xf32> to vector<1x8x256xf32>
    %102 = vector.broadcast %98 : vector<1x1x256xf32> to vector<1x8x256xf32>
    %103 = arith.mulf %102, %101 : vector<1x8x256xf32>
    %104 = arith.addf %97, %103 : vector<1x8x256xf32>
    %105 = vector.extract_strided_slice %88 {offsets = [0, 2, 0], sizes = [1, 1, 256], strides = [1, 1, 1]} : vector<1x4x256xf32> to vector<1x1x256xf32>
    %c2_45 = arith.constant 2 : index
    %c0_46 = arith.constant 0 : index
    %c0_47 = arith.constant 0 : index
    %106 = vector.load %arg6[%c2_45, %c0_46, %c0_47] : memref<8x8x256xf32, #tpu.memory_space<vmem>>, vector<1x8x256xf32>
    %107 = vector.shape_cast %106 : vector<1x8x256xf32> to vector<8x256xf32>
    %108 = vector.shape_cast %107 : vector<8x256xf32> to vector<1x8x256xf32>
    %109 = vector.broadcast %105 : vector<1x1x256xf32> to vector<1x8x256xf32>
    %110 = arith.mulf %109, %108 : vector<1x8x256xf32>
    %111 = arith.addf %104, %110 : vector<1x8x256xf32>
    %112 = vector.extract_strided_slice %88 {offsets = [0, 3, 0], sizes = [1, 1, 256], strides = [1, 1, 1]} : vector<1x4x256xf32> to vector<1x1x256xf32>
    %c3_48 = arith.constant 3 : index
    %c0_49 = arith.constant 0 : index
    %c0_50 = arith.constant 0 : index
    %113 = vector.load %arg6[%c3_48, %c0_49, %c0_50] : memref<8x8x256xf32, #tpu.memory_space<vmem>>, vector<1x8x256xf32>
    %114 = vector.shape_cast %113 : vector<1x8x256xf32> to vector<8x256xf32>
    %115 = vector.shape_cast %114 : vector<8x256xf32> to vector<1x8x256xf32>
    %116 = vector.broadcast %112 : vector<1x1x256xf32> to vector<1x8x256xf32>
    %117 = arith.mulf %116, %115 : vector<1x8x256xf32>
    %118 = arith.addf %111, %117 : vector<1x8x256xf32>
    %119 = vector.extract_strided_slice %0 {offsets = [0, 0, 0], sizes = [1, 1, 256], strides = [1, 1, 1]} : vector<1x4x256xf32> to vector<1x1x256xf32>
    %c4_51 = arith.constant 4 : index
    %c0_52 = arith.constant 0 : index
    %c0_53 = arith.constant 0 : index
    %120 = vector.load %arg6[%c4_51, %c0_52, %c0_53] : memref<8x8x256xf32, #tpu.memory_space<vmem>>, vector<1x8x256xf32>
    %121 = vector.shape_cast %120 : vector<1x8x256xf32> to vector<8x256xf32>
    %122 = vector.shape_cast %121 : vector<8x256xf32> to vector<1x8x256xf32>
    %123 = vector.broadcast %119 : vector<1x1x256xf32> to vector<1x8x256xf32>
    %124 = arith.mulf %123, %122 : vector<1x8x256xf32>
    %125 = arith.addf %118, %124 : vector<1x8x256xf32>
    %126 = vector.extract_strided_slice %0 {offsets = [0, 1, 0], sizes = [1, 1, 256], strides = [1, 1, 1]} : vector<1x4x256xf32> to vector<1x1x256xf32>
    %c5_54 = arith.constant 5 : index
    %c0_55 = arith.constant 0 : index
    %c0_56 = arith.constant 0 : index
    %127 = vector.load %arg6[%c5_54, %c0_55, %c0_56] : memref<8x8x256xf32, #tpu.memory_space<vmem>>, vector<1x8x256xf32>
    %128 = vector.shape_cast %127 : vector<1x8x256xf32> to vector<8x256xf32>
    %129 = vector.shape_cast %128 : vector<8x256xf32> to vector<1x8x256xf32>
    %130 = vector.broadcast %126 : vector<1x1x256xf32> to vector<1x8x256xf32>
    %131 = arith.mulf %130, %129 : vector<1x8x256xf32>
    %132 = arith.addf %125, %131 : vector<1x8x256xf32>
    %133 = vector.extract_strided_slice %0 {offsets = [0, 2, 0], sizes = [1, 1, 256], strides = [1, 1, 1]} : vector<1x4x256xf32> to vector<1x1x256xf32>
    %c6_57 = arith.constant 6 : index
    %c0_58 = arith.constant 0 : index
    %c0_59 = arith.constant 0 : index
    %134 = vector.load %arg6[%c6_57, %c0_58, %c0_59] : memref<8x8x256xf32, #tpu.memory_space<vmem>>, vector<1x8x256xf32>
    %135 = vector.shape_cast %134 : vector<1x8x256xf32> to vector<8x256xf32>
    %136 = vector.shape_cast %135 : vector<8x256xf32> to vector<1x8x256xf32>
    %137 = vector.broadcast %133 : vector<1x1x256xf32> to vector<1x8x256xf32>
    %138 = arith.mulf %137, %136 : vector<1x8x256xf32>
    %139 = arith.addf %132, %138 : vector<1x8x256xf32>
    %140 = vector.extract_strided_slice %0 {offsets = [0, 3, 0], sizes = [1, 1, 256], strides = [1, 1, 1]} : vector<1x4x256xf32> to vector<1x1x256xf32>
    %c7_60 = arith.constant 7 : index
    %c0_61 = arith.constant 0 : index
    %c0_62 = arith.constant 0 : index
    %141 = vector.load %arg6[%c7_60, %c0_61, %c0_62] : memref<8x8x256xf32, #tpu.memory_space<vmem>>, vector<1x8x256xf32>
    %142 = vector.shape_cast %141 : vector<1x8x256xf32> to vector<8x256xf32>
    %143 = vector.shape_cast %142 : vector<8x256xf32> to vector<1x8x256xf32>
    %144 = vector.broadcast %140 : vector<1x1x256xf32> to vector<1x8x256xf32>
    %145 = arith.mulf %144, %143 : vector<1x8x256xf32>
    %146 = arith.addf %139, %145 : vector<1x8x256xf32>
    %c0_63 = arith.constant 0 : index
    %c0_64 = arith.constant 0 : index
    %c0_65 = arith.constant 0 : index
    %147 = vector.load %arg8[%c0_63, %c0_64, %c0_65] : memref<1x8x256xf32, #tpu.memory_space<vmem>>, vector<1x8x256xf32>
    tpu.vector_store %arg8[%c0_63, %c0_64, %c0_65], %146 {strides = array<i32>} : memref<1x8x256xf32, #tpu.memory_space<vmem>>, vector<1x8x256xf32>,
    return
  }
  func.func @transform_0(%arg0: i32) -> (i32, i32, i32) {
    %c0_i32 = arith.constant 0 : i32
    %c0_i32_0 = arith.constant 0 : i32
    %c0_i32_1 = arith.constant 0 : i32
    return %arg0, %c0_i32, %c0_i32_0 : i32, i32, i32
  }
  func.func @transform_1(%arg0: i32) -> (i32, i32, i32) {
    %c0_i32 = arith.constant 0 : i32
    %c0_i32_0 = arith.constant 0 : i32
    %c0_i32_1 = arith.constant 0 : i32
    %c0_i32_2 = arith.constant 0 : i32
    return %c0_i32, %c0_i32_0, %c0_i32_1 : i32, i32, i32
  }
  func.func @transform_2(%arg0: i32) -> (i32, i32) {
    %c0_i32 = arith.constant 0 : i32
    %c0_i32_0 = arith.constant 0 : i32
    %c0_i32_1 = arith.constant 0 : i32
    return %c0_i32, %c0_i32_0 : i32, i32
  }
  func.func @transform_3(%arg0: i32) -> (i32, i32, i32) {
    %c0_i32 = arith.constant 0 : i32
    %c0_i32_0 = arith.constant 0 : i32
    %c0_i32_1 = arith.constant 0 : i32
    %c0_i32_2 = arith.constant 0 : i32
    return %c0_i32, %c0_i32_0, %c0_i32_1 : i32, i32, i32
  }
  func.func @transform_4(%arg0: i32) -> (i32, i32) {
    %c0_i32 = arith.constant 0 : i32
    %c0_i32_0 = arith.constant 0 : i32
    %c0_i32_1 = arith.constant 0 : i32
    return %c0_i32, %c0_i32_0 : i32, i32
  }
  func.func @transform_5(%arg0: i32) -> (i32, i32, i32) {
    %c0_i32 = arith.constant 0 : i32
    %c0_i32_0 = arith.constant 0 : i32
    %c0_i32_1 = arith.constant 0 : i32
    %c0_i32_2 = arith.constant 0 : i32
    return %c0_i32, %c0_i32_0, %c0_i32_1 : i32, i32, i32
  }
  func.func @transform_6(%arg0: i32) -> (i32, i32) {
    %c0_i32 = arith.constant 0 : i32
    %c0_i32_0 = arith.constant 0 : i32
    %c0_i32_1 = arith.constant 0 : i32
    return %c0_i32, %c0_i32_0 : i32, i32
  }
  func.func @transform_7(%arg0: i32) -> (i32, i32, i32) {
    %c0_i32 = arith.constant 0 : i32
    %c0_i32_0 = arith.constant 0 : i32
    %c0_i32_1 = arith.constant 0 : i32
    return %arg0, %c0_i32, %c0_i32_0 : i32, i32, i32
  }
}

</mosaic_0001>

<bundles_post_ra>
// kernel: tpu_custom_call.1
= control target key start
LH: loop header
LB: loop body
LE: loop exit
PB: predicated region body
PF: predicated region fallthrough
CT: control target
= control target key end

     0   :  { %12 = vsyncpa [#allocation3], 0  ;;  %s1783_s0 = inlined_call_operand.hbm [shape: f32[2,4,256], index: 0, kind: input, shape index: {}]   ;;  %s1784_s1 = inlined_call_operand.hbm [shape: f32[4,4,256], index: 1, kind: input, shape index: {}]   ;;  %s1785_s2 = inlined_call_operand.hbm [shape: f32[4,256], index: 2, kind: input, shape index: {}]   ;;  %s1786_s3 = inlined_call_operand.hbm [shape: f32[9,4,256], index: 3, kind: input, shape index: {}]   ;;  %s1787_s4 = inlined_call_operand.hbm [shape: f32[4,256], index: 4, kind: input, shape index: {}]   ;;  %s1788_s5 = inlined_call_operand.hbm [shape: f32[8,8,256], index: 5, kind: input, shape index: {}]   ;;  %s1789_s6 = inlined_call_operand.vmem [shape: f32[8,256], index: 6, kind: input, shape index: {}]   ;;  %s1790_s7 = inlined_call_operand.hbm [shape: f32[2,8,256], index: 7, kind: output, shape index: {}]  }
   0x1   :  { %14 = vsyncpa [#allocation3 + $0x1], 0 }
   0x2   :  { %15 = vsyncpa [#allocation6], 0 }
   0x3   :  { %16 = vsyncpa [#allocation9], 0 }
   0x4   :  { %17 = vsyncpa [#allocation12], 0 }
   0x5   :  { %18 = vsyncpa [#allocation4], 0 }
   0x6   :  { %20 = vsyncpa [#allocation4 + $0x1], 0  ;;  %s1370_s24 = smov 0   ;;  %s1372_s25 = smov 0  }
   0x7   :  { %s1374_s26 = smov 0   ;;  %s1376_s27 = smov 0  }
   0x8 LB: > { %s1311_s28 = smov [#allocation5]   ;;  %s1391_s30 = sadd.s32 4294967295, %s1309_s27   ;;  %s1309_s27 = sphi %s1376_s27, %s1815_s27   ;;  %s1305_s26 = sphi %s1374_s26, %s1814_s26   ;;  %s1301_s25 = sphi %s1372_s25, %s1813_s25   ;;  %s1297_s24 = sphi %s1370_s24, %s1812_s24  }
   0x9   : > { %s221_s29 = sshll.u32 %s1311_s28, 4  ;;  %p915_p0 = scmp.ge.s32.totalorder %s1309_s27, 1  ;;  %s1396_s29 = int_to_ptr.vmem [resolvable:$true] %s221_s29 }
   0xa   : > { %p1791_p1 = scmp.eq.s32.totalorder %s1391_s30, 0  ;;  %p209_p2 = scmp.lt.s32.totalorder %s1309_s27, 3 }
   0xb   : > { %s1312_s9 = smov [#allocation8]   ;;  %s1313_s12 = smov [#allocation7]  }
   0xc   : > { %p1398_p3 = pnand %p915_p0, %p209_p2  ;;  %s245_s10 = sshll.u32 %s1312_s9, 4  ;;  %s1411_s10 = int_to_ptr.vmem [resolvable:$true] %s245_s10 }
   0xd   : > { %s235_s13 = sshll.u32 %s1313_s12, 4  ;;  %s1061_s16 = scalar_lea.hbm %s1784_s1, 512  ;;  %s1413_s13 = int_to_ptr.vmem [resolvable:$true] %s235_s13 }
   0xe   : > { %s1794_s8 = scalar_select %p1398_p3, 1, 0 }
   0xf   : > { %p964_p5 = pneg %p1398_p3  ;;  %p1062_p7 = scmp.ne.s32.totalorder %s1784_s1, %s1061_s16 }
  0x10   : > { %p1068_p11 = scmp.lt.u32.totalorder %s1061_s16, %s1784_s1 }
  0x11   : > { %p1407_p6 = pnand %p964_p5, %p1791_p1 }
  0x13   : > { %p1423_p8 = pneg %p1407_p6 }
  0x15   : > { %p1064_p9 = pnand %p1423_p8, %p1062_p7 }
  0x17   : > { %p1065_p10 = pneg %p1064_p9 }
  0x19   : > { %p1070_p12 = pnand %p1068_p11, %p1065_p10 }
  0x1b   : > { %1073 = shalt.err (!%p1070_p12)
}
  0x1c   : > { %s1074_s22 = scalar_lea.vmem %s1396_s29, 512  ;;  %p1082_p5 = scmp.lt.s32.totalorder %s1396_s29, %s1396_s29 }
  0x1d   : > { %p1075_p13 = scmp.ne.s32.totalorder %s1396_s29, %s1074_s22  ;;  %p1083_p4 = scmp.lt.s32.totalorder %s1074_s22, %s1074_s22 }
  0x1f   : > { %p1077_p0 = pnand %p1075_p13, %p1423_p8  ;;  %p1084_p7 = por %p1083_p4, %p1082_p5 }
  0x21   : > { %p1078_p2 = pneg %p1077_p0 }
  0x23   : > { %p1085_p9 = pnand %p1084_p7, %p1078_p2 }
  0x25   : > { %1088 = shalt.err (!%p1085_p9)
}
  0x26   : > { %s1314_s23 = smov 128   ;;  %s1315_s28 = smov 8  }
  0x27   : > { %967 = dma.hbm_to_vmem [thread:$0]  (!%p1407_p6), %s1784_s1, 512, %s1396_s29, [#allocation6], %s1314_s23, %s1314_s23, %s1315_s28  }
  0x28   : > { %s1089_s16 = scalar_lea.hbm %s1786_s3, 1152 }
  0x29   : > { %p1090_p4 = scmp.ne.s32.totalorder %s1786_s3, %s1089_s16  ;;  %p1096_p12 = scmp.lt.u32.totalorder %s1089_s16, %s1786_s3 }
  0x2b   : > { %p1092_p10 = pnand %p1090_p4, %p1423_p8 }
  0x2d   : > { %p1093_p11 = pneg %p1092_p10 }
  0x2f   : > { %p1098_p13 = pnand %p1096_p12, %p1093_p11 }
  0x31   : > { %1101 = shalt.err (!%p1098_p13)
}
  0x32   : > { %s1102_s29 = scalar_lea.vmem %s1411_s10, 1152  ;;  %p1110_p7 = scmp.lt.s32.totalorder %s1411_s10, %s1411_s10 }
  0x33   : > { %p1103_p0 = scmp.ne.s32.totalorder %s1411_s10, %s1102_s29  ;;  %p1111_p9 = scmp.lt.s32.totalorder %s1102_s29, %s1102_s29 }
  0x35   : > { %p1105_p2 = pnand %p1103_p0, %p1423_p8  ;;  %p1112_p4 = por %p1111_p9, %p1110_p7 }
  0x37   : > { %p1106_p5 = pneg %p1105_p2 }
  0x39   : > { %p1113_p10 = pnand %p1112_p4, %p1106_p5 }
  0x3b   : > { %1116 = shalt.err (!%p1113_p10)
}
  0x3c   : > { %973 = dma.hbm_to_vmem [thread:$0]  (!%p1407_p6), %s1786_s3, 1152, %s1411_s10, [#allocation9], %s1314_s23, %s1314_s23, %s1315_s28  }
  0x3d   : > { %s1117_s15 = scalar_lea.hbm %s1785_s2, 128 }
  0x3e   : > { %p1118_p11 = scmp.ne.s32.totalorder %s1785_s2, %s1117_s15  ;;  %p1124_p0 = scmp.lt.u32.totalorder %s1117_s15, %s1785_s2 }
  0x40   : > { %p1120_p12 = pnand %p1118_p11, %p1423_p8 }
  0x42   : > { %p1121_p13 = pneg %p1120_p12 }
  0x44   : > { %p1126_p2 = pnand %p1124_p0, %p1121_p13 }
  0x46   : > { %1129 = shalt.err (!%p1126_p2)
}
  0x47   : > { %s1130_s10 = scalar_lea.vmem %s1413_s13, 128  ;;  %p1138_p4 = scmp.lt.s32.totalorder %s1413_s13, %s1413_s13 }
  0x48   : > { %p1131_p5 = scmp.ne.s32.totalorder %s1413_s13, %s1130_s10  ;;  %p1139_p10 = scmp.lt.s32.totalorder %s1130_s10, %s1130_s10 }
  0x4a   : > { %p1133_p7 = pnand %p1131_p5, %p1423_p8  ;;  %p1140_p11 = por %p1139_p10, %p1138_p4 }
  0x4c   : > { %p1134_p9 = pneg %p1133_p7 }
  0x4e   : > { %p1141_p12 = pnand %p1140_p11, %p1134_p9 }
  0x50   : > { %1144 = shalt.err (!%p1141_p12)
}
  0x51   : > { %970 = dma.hbm_to_vmem [thread:$0]  (!%p1407_p6), %s1785_s2, 128, %s1413_s13, [#allocation6]  }
  0x52   : > { %s1316_s21 = smov [#allocation10]   ;;  %s1317_s22 = smov [#allocation11]  }
  0x53   : > { %s259_s29 = sshll.u32 %s1316_s21, 4  ;;  %s269_s9 = sshll.u32 %s1317_s22, 4  ;;  %s260_s29 = int_to_ptr.vmem [resolvable:$true] %s259_s29  ;;  %s270_s9 = int_to_ptr.vmem [resolvable:$true] %s269_s9 }
  0x54   : > { %s1145_s15 = scalar_lea.hbm %s1787_s4, 128 }
  0x55   : > { %p1146_p13 = scmp.ne.s32.totalorder %s1787_s4, %s1145_s15  ;;  %p1152_p5 = scmp.lt.u32.totalorder %s1145_s15, %s1787_s4 }
  0x57   : > { %p1148_p0 = pnand %p1146_p13, %p1423_p8 }
  0x59   : > { %p1149_p2 = pneg %p1148_p0 }
  0x5b   : > { %p1154_p7 = pnand %p1152_p5, %p1149_p2 }
  0x5d   : > { %1157 = shalt.err (!%p1154_p7)
}
  0x5e   : > { %s1158_s13 = scalar_lea.vmem %s260_s29, 128  ;;  %p1166_p11 = scmp.lt.s32.totalorder %s260_s29, %s260_s29 }
  0x5f   : > { %p1159_p9 = scmp.ne.s32.totalorder %s260_s29, %s1158_s13  ;;  %p1167_p12 = scmp.lt.s32.totalorder %s1158_s13, %s1158_s13 }
  0x61   : > { %p1161_p4 = pnand %p1159_p9, %p1423_p8  ;;  %p1168_p1 = por %p1167_p12, %p1166_p11 }
  0x63   : > { %p1162_p10 = pneg %p1161_p4 }
  0x65   : > { %p1169_p3 = pnand %p1168_p1, %p1162_p10 }
  0x67   : > { %1172 = shalt.err (!%p1169_p3)
}
  0x68   : > { %976 = dma.hbm_to_vmem [thread:$0]  (!%p1407_p6), %s1787_s4, 128, %s260_s29, [#allocation9]  }
  0x69   : > { %s1173_s22 = scalar_lea.hbm %s1788_s5, 2048 }
  0x6a   : > { %p1174_p13 = scmp.ne.s32.totalorder %s1788_s5, %s1173_s22  ;;  %p1180_p3 = scmp.lt.u32.totalorder %s1173_s22, %s1788_s5 }
  0x6c   : > { %p1176_p0 = pnand %p1174_p13, %p1423_p8 }
  0x6e   : > { %p1177_p1 = pneg %p1176_p0 }
  0x70   : > { %p1182_p2 = pnand %p1180_p3, %p1177_p1 }
  0x72   : > { %1185 = shalt.err (!%p1182_p2)
}
  0x73   : > { %s1186_s17 = scalar_lea.vmem %s270_s9, 2048  ;;  %p1194_p4 = scmp.lt.s32.totalorder %s270_s9, %s270_s9 }
  0x74   : > { %p1187_p5 = scmp.ne.s32.totalorder %s270_s9, %s1186_s17  ;;  %p1195_p10 = scmp.lt.s32.totalorder %s1186_s17, %s1186_s17 }
  0x76   : > { %p1189_p7 = pnand %p1187_p5, %p1423_p8  ;;  %p1196_p11 = por %p1195_p10, %p1194_p4 }
  0x78   : > { %p1190_p9 = pneg %p1189_p7 }
  0x7a   : > { %p1197_p12 = pnand %p1196_p11, %p1190_p9 }
  0x7c   : > { %1200 = shalt.err (!%p1197_p12)
}
  0x7d   : > { %s1318_s29 = smov 256   ;;  %s1319_s19 = smov 16  }
  0x7e   : > { %979 = dma.hbm_to_vmem [thread:$0]  (!%p1407_p6), %s1788_s5, 2048, %s270_s9, [#allocation12], %s1318_s29, %s1318_s29, %s1319_s19  }
  0x7f   : > { %s914_s13 = sadd.s32 4294967294, %s1309_s27   ;;  %s1528_s10 = sadd.s32 1, %s1309_s27  }
  0x80   : > { %s33_s23 = sadd.s32 1, %s1305_s26  ;;  %s30_s28 = ssub.s32 %s1309_s27, %s1528_s10 }
  0x81   : > { %p40_p8 = scmp.ne.s32.totalorder %s1305_s26, %s1301_s25  ;;  %p31_p13 = scmp.eq.s32.totalorder %s30_s28, 0 }
  0x82   : > { %p41_p0 = scmp.eq.s32.totalorder %s1309_s27, 0  ;;  %p46_p1 = scmp.ne.s32.totalorder %s1301_s25, %s1297_s24 }
  0x83   : > { %p196_p3 = scmp.eq.s32.totalorder %s1391_s30, 1  ;;  %p1797_p5 = scmp.eq.s32.totalorder %s1391_s30, 0 }
  0x84   : > { %s1540_s21 = scalar_select %p31_p13, %s1305_s26, %s33_s23  }
  0x85   : > { %p42_p2 = por %p41_p0, %p40_p8  ;;  %p1544_p7 = por %p1797_p5, %p46_p1 }
  0x86   : > { %p1548_p6 = por %p196_p3, %p40_p8  ;;  %p202_p9 = scmp.eq.s32.totalorder %s914_s13, 1 }
  0x87   : > { %p993_p4 = scmp.lt.s32.totalorder %s1309_s27, 2  ;;  %s286_s22 = sand.u32 1, %s1305_s26  }
  0x88   : > { %s1799_s9 = scalar_select %p1548_p6, 1, 0 }
  0x89   : > { %p1554_p10 = por %p202_p9, %p46_p1  ;;  %s922_s14 = sshll.u32 %s286_s22, 3 }
  0x8a   : > { %s938_s15 = sshll.u32 %s1309_s27, 7  ;;  %s290_s19 = scalar_lea.vmem [#allocation2], %s922_s14 }
  0x8b   : > { %s1800_s12 = scalar_select %p1554_p10, 1, 0 }
  0x8c   : > { %s1562_s29 = scalar_lea.hbm %s1783_s0, %s938_s15  ;;  %s298_s18 = sshll.u32 %s290_s19, 4  ;;  %s1568_s18 = int_to_ptr.vmem [resolvable:$true] %s298_s18 }
  0x8d   : > { %p1564_p11 = pnand %p993_p4, %p42_p2  ;;  %s287_s13 = scalar_lea.sflag [#allocation3], %s286_s22 }
  0x8e   : > { %s1201_s23 = scalar_lea.hbm %s1562_s29, 128  ;;  %s1206_s15 = scalar_lea.hbm %s1783_s0, 256 }
  0x8f   : > { %p1202_p12 = scmp.ne.s32.totalorder %s1562_s29, %s1201_s23  ;;  %p1203_p8 = pneg %p1564_p11 }
  0x90   : > { %p1207_p1 = scmp.lt.u32.totalorder %s1562_s29, %s1783_s0  ;;  %p1208_p3 = scmp.lt.u32.totalorder %s1206_s15, %s1201_s23 }
  0x91   : > { %p1204_p13 = pnand %p1203_p8, %p1202_p12  ;;  %p1210_p5 = scmp.lt.u32.totalorder %s1201_s23, %s1562_s29 }
  0x92   : > { %p1209_p2 = por %p1208_p3, %p1207_p1 }
  0x93   : > { %p1205_p0 = pneg %p1204_p13 }
  0x94   : > { %p1211_p9 = por %p1210_p5, %p1209_p2 }
  0x96   : > { %p1212_p4 = pnand %p1211_p9, %p1205_p0 }
  0x98   : > { %1215 = shalt.err (!%p1212_p4)
}
  0x99   : > { %s1216_s22 = scalar_lea.vmem %s1568_s18, 128  ;;  %s1320_s19 = smov [#allocation2]  }
  0x9a   : > { %p1217_p12 = scmp.ne.s32.totalorder %s1568_s18, %s1216_s22  ;;  %s1221_s28 = sshll.u32 %s1320_s19, 4  ;;  %s1222_s28 = int_to_ptr.vmem [resolvable:$false] %s1221_s28 }
  0x9b   : > { %s1223_s14 = scalar_lea.vmem %s1222_s28, 256  ;;  %p1224_p6 = scmp.lt.s32.totalorder %s1568_s18, %s1222_s28 }
  0x9c   : > { %p1219_p13 = pnand %p1217_p12, %p1203_p8  ;;  %p1225_p1 = scmp.lt.s32.totalorder %s1223_s14, %s1216_s22 }
  0x9e   : > { %p1220_p10 = pneg %p1219_p13  ;;  %p1226_p3 = por %p1225_p1, %p1224_p6 }
  0xa0   : > { %p1227_p2 = pnand %p1226_p3, %p1220_p10 }
  0xa2   : > { %1230 = shalt.err (!%p1227_p2)
}
  0xa3   : > { %983 = dma.hbm_to_vmem [thread:$0]  (!%p1564_p11), %s1562_s29, 128, %s1568_s18, %s287_s13  }
  0xa4   : > { %p1802_p0 = scmp.ne.s32.totalorder %s1794_s8, 0 }
  0xa5   : > { %s1598_s23 = sand.u32 (!%p1802_p0), 1, %s1301_s25  }
  0xa6   : > { %307 = sbr.rel (%p1802_p0) target bundleno = 395 (0x18b), region = 48  ;;  %s926_s15 = sshll.u32 (!%p1802_p0), %s1598_s23, 3 }
  0xa7   : > { %s310_s16 = scalar_lea.sflag (!%p1802_p0), [#allocation3], %s1598_s23  ;;  %s313_s17 = scalar_lea.vmem (!%p1802_p0), [#allocation2], %s926_s15 }
  0xad   : > { %1276 = dma.done.wait (%p1544_p7), %s310_s16, 128  }
  0xae   : > { %1278 = vsyncadd (%p1544_p7), %s310_s16, 4294967168  ;;  %p1803_p6 = scmp.eq.s32.totalorder %s1391_s30, 0 }
  0xb0   : > { %1280 = dma.done.wait (%p1803_p6), [#allocation6], 640   ;;  %p1804_p10 = pmov %p1803_p6 }
  0xb1   : > { %p1805_p11 = pmov %p1803_p6 }
  0xb2   : > { %1282 = vsyncadd (%p1804_p10), [#allocation6], 4294966656 }
  0xb3   : > { %1284 = dma.done.wait (%p1805_p11), [#allocation9], 1280   ;;  %p1806_p8 = pmov %p1803_p6 }
  0xb4   : > { %p1807_p5 = pmov %p1803_p6 }
  0xb5   : > { %1286 = vsyncadd (%p1806_p8), [#allocation9], 4294966016 }
  0xb6   : > { %1288 = dma.done.wait (%p1807_p5), [#allocation12], 2048   ;;  %p1808_p9 = pmov %p1807_p5 }
  0xb7   : > { %v368_v0 = vlaneseq  ;;  %v364_v8 = vld [vmem:[%s313_s17] sm:$0xff]  ;;  %v366_v9 = vld [vmem:[#allocation5] sm:$0xff]  ;;  %v397_v15 = vld [vmem:[#allocation5 + $0x8] sm:$0xff]  ;;  %s1321_s8 = smov 16   ;;  %s1322_s11 = smov 17  }
  0xb8   : > { %1290 = vsyncadd (%p1808_p9), [#allocation12], 4294965248  ;;  %v387_v14 = vcombine.high %v366_v9, %v366_v9  ;;  %v427_v17 = vld [vmem:[#allocation5 + $0x10] sm:$0xff]  ;;  %v417_v19 = vcombine.high %v397_v15, %v397_v15  ;;  %v457_v29 = vld [vmem:[#allocation5 + $0x18] sm:$0xff]  ;;  %s1323_s29 = smov 15   ;;  %s1324_s18 = smov 1  }
  0xb9   : > { %v1619_v1 = vshrl.u32 %v368_v0, 7  ;;  %v447_v25 = vcombine.high %v427_v17, %v427_v17  ;;  %v365_v35 = vld [vmem:[#allocation7] sm:$0xff]  ;;  %v477_v42 = vcombine.high %v457_v29, %v457_v29  ;;  %s1325_s20 = smov 127   ;;  %s1326_s13 = smov 113   ;;  %v1682_v58 = vand.u32 127, %v368_v0  ;;  %v490_v60 = vld [vmem:[#allocation8 + $0x20] sm:$0xff] }
  0xba   : > { %s1327_s22 = smov 112   ;;  %s1328_s19 = smov 111   ;;  %v524_v61 = vld [vmem:[#allocation8 + $0x8] sm:$0xff]  ;;  %v505_v62 = vld [vmem:[#allocation8] sm:$0xff] }
  0xbb   : > { %v1622_v2 = vsub.s32 0, %v1619_v1  ;;  %v374_v3 = vsub.s32 4, %v1619_v1  ;;  %v1626_v4 = vsub.s32 1, %v1619_v1  ;;  %v404_v5 = vsub.s32 5, %v1619_v1  ;;  %s932_s17 = sshll.u32 %s1598_s23, 4  ;;  %p1809_p4 = scmp.ne.s32.totalorder %s1799_s9, 0 }
  0xbc   : > { %v1630_v6 = vsub.s32 2, %v1619_v1  ;;  %v434_v7 = vsub.s32 6, %v1619_v1  ;;  %v1634_v10 = vsub.s32 3, %v1619_v1  ;;  %v464_v11 = vsub.s32 7, %v1619_v1 }
  0xbd   : > { %v371_v12 = vrot.slane %v364_v8, %v1622_v2  ;;  %v375_v13 = vrot.slane %v364_v8, %v374_v3  ;;  %v401_v16 = vrot.slane %v364_v8, %v1626_v4  ;;  %v405_v18 = vrot.slane %v364_v8, %v404_v5 }
  0xbe   : > { %v431_v20 = vrot.slane %v364_v8, %v1630_v6  ;;  %v435_v21 = vrot.slane %v364_v8, %v434_v7  ;;  %v461_v30 = vrot.slane %v364_v8, %v1634_v10  ;;  %v465_v34 = vrot.slane %v364_v8, %v464_v11  ;;  %v543_v8 = vld [vmem:[#allocation8 + $0x10] sm:$0xff] }
  0xbf   : > { %v1647_v22 = vrot.slane %v371_v12, %v1622_v2  ;;  %v1650_v23 = vrot.slane %v375_v13, %v1622_v2  ;;  %v1653_v24 = vrot.slane %v401_v16, %v1626_v4  ;;  %v1656_v26 = vrot.slane %v405_v18, %v1626_v4  ;;  %v562_v13 = vld [vmem:[#allocation8 + $0x18] sm:$0xff] }
  0xc0   : > { %v1659_v27 = vrot.slane %v431_v20, %v1630_v6  ;;  %v1662_v28 = vrot.slane %v435_v21, %v1630_v6  ;;  %v1674_v39 = vrot.slane %v461_v30, %v1634_v10  ;;  %v1677_v41 = vrot.slane %v465_v34, %v1634_v10 }
  0xc1   : > { %v389_v31 = vmul.f32 %v1647_v22, %v366_v9  ;;  %v390_v32 = vmul.f32 %v387_v14, %v1650_v23  ;;  %v419_v33 = vmul.f32 %v1653_v24, %v397_v15  ;;  %v420_v36 = vmul.f32 %v417_v19, %v1656_v26  ;;  %v488_v14 = vld [vmem:[#allocation10] sm:$0xff] }
  0xc2   : > { %v449_v37 = vmul.f32 %v1659_v27, %v427_v17  ;;  %v450_v38 = vmul.f32 %v447_v25, %v1662_v28  ;;  %v479_v44 = vmul.f32 %v1674_v39, %v457_v29  ;;  %v480_v47 = vmul.f32 %v477_v42, %v1677_v41 }
  0xc3   : > { %v393_v40 = vcombine.low %v389_v31, %v390_v32  ;;  %v423_v43 = vcombine.low %v419_v33, %v420_v36  ;;  %vm520_vm0 = vcmp.lt.s32.totalorder %v1682_v58, 16  ;;  %v526_v15 = vcombine.high %v524_v61, %v524_v61  ;;  %v581_v33 = vld [vmem:[#allocation8 + $0x28] sm:$0xff] }
  0xc4   : > { %v453_v46 = vcombine.low %v449_v37, %v450_v38  ;;  %v483_v49 = vcombine.low %v479_v44, %v480_v47  ;;  %vm539_vm1 = vcmp.lt.s32.totalorder %v1682_v58, 15  ;;  %vm502_vm2 = vcmp.lt.s32.totalorder %v1682_v58, 17  ;;  %v600_v38 = vld [vmem:[#allocation8 + $0x30] sm:$0xff] }
  0xc5   : > { %v395_v45 = vadd.f32 %v393_v40, %v365_v35  ;;  %v507_v16 = vcombine.high %v505_v62, %v505_v62  ;;  %v545_v18 = vcombine.high %v543_v8, %v543_v8  ;;  %vm558_vm3 = vcmp.lt.s32.totalorder %v1682_v58, 1 }
  0xc6   : > { %v564_v19 = vcombine.high %v562_v13, %v562_v13  ;;  %vm577_vm4 = vcmp.lt.s32.totalorder %v1682_v58, 127  ;;  %v583_v47 = vcombine.high %v581_v33, %v581_v33  ;;  %vm596_vm5 = vcmp.lt.s32.totalorder %v1682_v58, 113 }
  0xc7   : > { %v425_v48 = vadd.f32 %v423_v43, %v395_v45  ;;  %vm615_vm6 = vcmp.lt.s32.totalorder %v1682_v58, 112  ;;  %vm634_vm7 = vcmp.lt.s32.totalorder %v1682_v58, 111 }
  0xc9   : > { %v455_v50 = vadd.f32 %v453_v46, %v425_v48 }
  0xcb   : > { %v485_v51 = vadd.f32 %v483_v49, %v455_v50 }
  0xcd   : > { %v486_v52 = vmul.f32 0.01, %v485_v51 }
  0xcf   : > { %v487_v53 = vmax.f32 %v485_v51, %v486_v52  ;;  %v602_v51 = vcombine.high %v600_v38, %v600_v38 }
  0xd1   : > { %516 = vrot.lane.b32.xlu1 %v487_v53, %s1321_s8  ;;  %496 = vrot.lane.b32.xlu0 %v487_v53, %s1322_s11  ;;  %v494_v54 = vcombine.high %v487_v53, %v487_v53  ;;  %v491_v12 = vmul.f32 %v490_v60, %v487_v53 }
  0xd3   : > { %v492_v25 = vadd.f32 %v491_v12, %v488_v14 }
  0xd5   : > { %535 = vrot.lane.b32.xlu0 %v487_v53, %s1323_s29  ;;  %518 = vrot.lane.b32.xlu1 %v494_v54, %s1321_s8  ;;  %s939_s8 = sshll.u32 %s1391_s30, 8 }
  0xd9   : > { %554 = vrot.lane.b32.xlu0 %v487_v53, %s1324_s18  ;;  %537 = vrot.lane.b32.xlu1 %v494_v54, %s1323_s29 }
  0xdd   : > { %556 = vrot.lane.b32.xlu1 %v494_v54, %s1324_s18  ;;  %498 = vrot.lane.b32.xlu0 %v494_v54, %s1322_s11  ;;  %s363_s11 = scalar_lea.vmem [#allocation13], %s932_s17 }
  0xde   : > { %s796_s29 = sshll.u32 %s363_s11, 4  ;;  %s1741_s29 = int_to_ptr.vmem [resolvable:$true] %s796_s29 }
  0xdf   : > { %s1231_s30 = scalar_lea.vmem %s1741_s29, 256 }
  0xe0   : > { %p1232_p7 = scmp.ne.s32.totalorder %s1741_s29, %s1231_s30 }
  0xe1   : > { %575 = vrot.lane.b32.xlu1 %v494_v54, %s1325_s20  ;;  %573 = vrot.lane.b32.xlu0 %v487_v53, %s1325_s20 }
  0xe2   : > { %p1233_p12 = pnand %p1232_p7, %p1809_p4 }
  0xe4   : > { %p1234_p13 = pneg %p1233_p12 }
  0xe5   : > { %594 = vrot.lane.b32.xlu1 %v494_v54, %s1326_s13  ;;  %592 = vrot.lane.b32.xlu0 %v487_v53, %s1326_s13  ;;  %s1739_s13 = scalar_lea.hbm %s1790_s7, %s939_s8 }
  0xe9   : > { %613 = vrot.lane.b32.xlu1 %v494_v54, %s1327_s22  ;;  %611 = vrot.lane.b32.xlu0 %v487_v53, %s1327_s22  ;;  %s782_s22 = scalar_lea.sflag [#allocation4], %s1598_s23 }
  0xed   : > { %632 = vrot.lane.b32.xlu1 %v494_v54, %s1328_s19  ;;  %630 = vrot.lane.b32.xlu0 %v487_v53, %s1328_s19  ;;  %s1329_s19 = smov [#allocation13]  }
  0xee   : > { %s1235_s28 = sshll.u32 %s1329_s19, 4  ;;  %s1236_s28 = int_to_ptr.vmem [resolvable:$false] %s1235_s28 }
  0xef   : > { %s1237_s14 = scalar_lea.vmem %s1236_s28, 512  ;;  %p1238_p1 = scmp.lt.s32.totalorder %s1741_s29, %s1236_s28 }
  0xf0   : > { %p1239_p3 = scmp.lt.s32.totalorder %s1237_s14, %s1231_s30 }
  0xf2   : > { %p1240_p2 = por %p1239_p3, %p1238_p1 }
  0xf4   : > { %p1241_p0 = pnand %p1240_p2, %p1234_p13 }
 0x143   : > { %v517_v55 = vpop.permute.xlu1 %516  ;;  %v497_v56 = vpop.permute.xlu0 %496 }
 0x147   : > { %v536_v57 = vpop.permute.xlu0 %535  ;;  %v519_v59 = vpop.permute.xlu1 %518 }
 0x148   : > { %v521_v0 = vsel %vm520_vm0, %v517_v55, %v519_v59  ;;  %v522_v17 = vsel %vm520_vm0, %v519_v59, %v517_v55 }
 0x149   : > { %v528_v34 = vmul.f32 %v524_v61, %v522_v17  ;;  %v529_v35 = vmul.f32 %v526_v15, %v521_v0  ;;  %v638_v17 = vld [vmem:[#allocation8 + $0x40] sm:$0xff] }
 0x14b   : > { %v555_v63 = vpop.permute.xlu0 %554  ;;  %v538_v9 = vpop.permute.xlu1 %537  ;;  %v532_v52 = vcombine.low %v528_v34, %v529_v35 }
 0x14c   : > { %v540_v29 = vsel %vm539_vm1, %v536_v57, %v538_v9  ;;  %v541_v30 = vsel %vm539_vm1, %v538_v9, %v536_v57 }
 0x14d   : > { %v547_v43 = vmul.f32 %v543_v8, %v541_v30  ;;  %v548_v44 = vmul.f32 %v545_v18, %v540_v29  ;;  %v640_v29 = vcombine.high %v638_v17, %v638_v17 }
 0x14f   : > { %v557_v20 = vpop.permute.xlu1 %556  ;;  %v499_v21 = vpop.permute.xlu0 %498  ;;  %v551_v57 = vcombine.low %v547_v43, %v548_v44 }
 0x150   : > { %v503_v31 = vsel %vm502_vm2, %v497_v56, %v499_v21  ;;  %v504_v32 = vsel %vm502_vm2, %v499_v21, %v497_v56  ;;  %v559_v40 = vsel %vm558_vm3, %v555_v63, %v557_v20  ;;  %v560_v42 = vsel %vm558_vm3, %v557_v20, %v555_v63  ;;  %v619_v56 = vld [vmem:[#allocation8 + $0x38] sm:$0xff] }
 0x151   : > { %v509_v36 = vmul.f32 %v505_v62, %v504_v32  ;;  %v510_v37 = vmul.f32 %v507_v16, %v503_v31  ;;  %v566_v53 = vmul.f32 %v562_v13, %v560_v42  ;;  %v567_v54 = vmul.f32 %v564_v19, %v559_v40 }
 0x152   : > { %v621_v12 = vcombine.high %v619_v56, %v619_v56 }
 0x153   : > { %v513_v45 = vcombine.low %v509_v36, %v510_v37  ;;  %v576_v46 = vpop.permute.xlu1 %575  ;;  %v574_v48 = vpop.permute.xlu0 %573  ;;  %v570_v14 = vcombine.low %v566_v53, %v567_v54 }
 0x154   : > { %v578_v49 = vsel %vm577_vm4, %v574_v48, %v576_v46  ;;  %v579_v50 = vsel %vm577_vm4, %v576_v46, %v574_v48 }
 0x155   : > { %v515_v55 = vadd.f32 %v513_v45, %v492_v25  ;;  %v585_v60 = vmul.f32 %v581_v33, %v578_v49  ;;  %v586_v61 = vmul.f32 %v583_v47, %v579_v50  ;;  %v651_v50 = vld [vmem:[#allocation11] sm:$0xff] }
 0x157   : > { %v534_v59 = vadd.f32 %v532_v52, %v515_v55  ;;  %v595_v62 = vpop.permute.xlu1 %594  ;;  %v593_v63 = vpop.permute.xlu0 %592  ;;  %v589_v18 = vcombine.low %v585_v60, %v586_v61  ;;  %v677_v60 = vld [vmem:[#allocation11 + $0x10] sm:$0xff]  ;;  %v678_v61 = vld [vmem:[#allocation11 + $0x18] sm:$0xff] }
 0x158   : > { %v597_v8 = vsel %vm596_vm5, %v593_v63, %v595_v62  ;;  %v598_v9 = vsel %vm596_vm5, %v595_v62, %v593_v63 }
 0x159   : > { %v553_v15 = vadd.f32 %v551_v57, %v534_v59  ;;  %v604_v16 = vmul.f32 %v600_v38, %v597_v8  ;;  %v605_v0 = vmul.f32 %v602_v51, %v598_v9  ;;  %v652_v51 = vld [vmem:[#allocation11 + $0x8] sm:$0xff]  ;;  %v702_v8 = vld [vmem:[#allocation11 + $0x20] sm:$0xff] }
 0x15a   : > { %v703_v9 = vld [vmem:[#allocation11 + $0x28] sm:$0xff] }
 0x15b   : > { %v572_v13 = vadd.f32 %v570_v14, %v553_v15  ;;  %v614_v19 = vpop.permute.xlu1 %613  ;;  %v612_v20 = vpop.permute.xlu0 %611  ;;  %v608_v31 = vcombine.low %v604_v16, %v605_v0  ;;  %v752_v0 = vld [vmem:[#allocation11 + $0x40] sm:$0xff] }
 0x15c   : > { %v616_v21 = vsel %vm615_vm6, %v612_v20, %v614_v19  ;;  %v617_v25 = vsel %vm615_vm6, %v614_v19, %v612_v20 }
 0x15d   : > { %v591_v30 = vadd.f32 %v589_v18, %v572_v13  ;;  %v623_v32 = vmul.f32 %v619_v56, %v616_v21  ;;  %v624_v33 = vmul.f32 %v621_v12, %v617_v25  ;;  %v727_v13 = vld [vmem:[#allocation11 + $0x30] sm:$0xff]  ;;  %v728_v18 = vld [vmem:[#allocation11 + $0x38] sm:$0xff] }
 0x15f   : > { %v610_v34 = vadd.f32 %v608_v31, %v591_v30  ;;  %v627_v35 = vcombine.low %v623_v32, %v624_v33  ;;  %v633_v36 = vpop.permute.xlu1 %632  ;;  %v631_v37 = vpop.permute.xlu0 %630  ;;  %v759_v30 = vld [vmem:[#allocation11 + $0x50] sm:$0xff]  ;;  %v760_v31 = vld [vmem:[#allocation11 + $0x58] sm:$0xff] }
 0x160   : > { %v635_v38 = vsel %vm634_vm7, %v631_v37, %v633_v36  ;;  %v636_v40 = vsel %vm634_vm7, %v633_v36, %v631_v37  ;;  %v767_v36 = vld [vmem:[#allocation11 + $0x68] sm:$0xff] }
 0x161   : > { %v629_v42 = vadd.f32 %v627_v35, %v610_v34  ;;  %v642_v43 = vmul.f32 %v638_v17, %v635_v38  ;;  %v643_v44 = vmul.f32 %v640_v29, %v636_v40  ;;  %v753_v17 = vld [vmem:[#allocation11 + $0x48] sm:$0xff]  ;;  %v766_v35 = vld [vmem:[#allocation11 + $0x60] sm:$0xff]  ;;  %v761_v40 = vmul.f32 %v759_v30, %v1653_v24 }
 0x162   : > { %v755_v29 = vmul.f32 %v753_v17, %v1650_v23 }
 0x163   : > { %v646_v45 = vcombine.low %v642_v43, %v643_v44  ;;  %v773_v43 = vld [vmem:[#allocation11 + $0x70] sm:$0xff] }
 0x165   : > { %v648_v46 = vadd.f32 %v646_v45, %v629_v42  ;;  %v762_v42 = vmul.f32 %v760_v31, %v1656_v26  ;;  %v768_v45 = vmul.f32 %v766_v35, %v1659_v27 }
 0x167   : > { %v657_v47 = vrot.slane %v648_v46, %v1622_v2  ;;  %v661_v58 = vrot.slane %v648_v46, %v374_v3  ;;  %v682_v48 = vrot.slane %v648_v46, %v1626_v4  ;;  %v686_v49 = vrot.slane %v648_v46, %v404_v5  ;;  %v649_v3 = vld [vmem:[%s1789_s6] sm:$0xff] }
 0x168   : > { %v707_v52 = vrot.slane %v648_v46, %v1630_v6  ;;  %v711_v53 = vrot.slane %v648_v46, %v434_v7  ;;  %v732_v54 = vrot.slane %v648_v46, %v1634_v10  ;;  %v736_v55 = vrot.slane %v648_v46, %v464_v11  ;;  %v650_v7 = vld [vmem:[%s1789_s6 + $0x8] sm:$0xff] }
 0x169   : > { %v667_v56 = vrot.slane %v657_v47, %v1622_v2  ;;  %v671_v5 = vrot.slane %v661_v58, %v1622_v2  ;;  %v692_v57 = vrot.slane %v682_v48, %v1626_v4  ;;  %v696_v59 = vrot.slane %v686_v49, %v1626_v4 }
 0x16a   : > { %v717_v62 = vrot.slane %v707_v52, %v1630_v6  ;;  %v721_v63 = vrot.slane %v711_v53, %v1630_v6  ;;  %v742_v2 = vrot.slane %v732_v54, %v1634_v10  ;;  %v746_v12 = vrot.slane %v736_v55, %v1634_v10 }
 0x16b   : > { %v672_v1 = vmul.f32 %v667_v56, %v651_v50  ;;  %v673_v11 = vmul.f32 %v671_v5, %v652_v51  ;;  %v697_v15 = vmul.f32 %v692_v57, %v677_v60  ;;  %v698_v16 = vmul.f32 %v696_v59, %v678_v61 }
 0x16c   : > { %v722_v21 = vmul.f32 %v717_v62, %v702_v8  ;;  %v723_v25 = vmul.f32 %v721_v63, %v703_v9  ;;  %v754_v6 = vmul.f32 %v752_v0, %v1647_v22  ;;  %v747_v33 = vmul.f32 %v742_v2, %v727_v13  ;;  %v774_v22 = vld [vmem:[#allocation11 + $0x78] sm:$0xff] }
 0x16d   : > { %v674_v14 = vadd.f32 %v672_v1, %v649_v3  ;;  %v675_v4 = vadd.f32 %v673_v11, %v650_v7  ;;  %v748_v34 = vmul.f32 %v746_v12, %v728_v18  ;;  %v769_v46 = vmul.f32 %v767_v36, %v1662_v28 }
 0x16e   : > { %v775_v48 = vmul.f32 %v773_v43, %v1674_v39  ;;  %v776_v49 = vmul.f32 %v774_v22, %v1677_v41 }
 0x16f   : > { %v699_v19 = vadd.f32 %v697_v15, %v674_v14  ;;  %v700_v20 = vadd.f32 %v698_v16, %v675_v4 }
 0x171   : > { %v724_v10 = vadd.f32 %v722_v21, %v699_v19  ;;  %v725_v32 = vadd.f32 %v723_v25, %v700_v20 }
 0x173   : > { %v749_v37 = vadd.f32 %v747_v33, %v724_v10  ;;  %v750_v38 = vadd.f32 %v748_v34, %v725_v32 }
 0x175   : > { %v756_v44 = vadd.f32 %v754_v6, %v749_v37  ;;  %v757_v23 = vadd.f32 %v755_v29, %v750_v38 }
 0x177   : > { %v763_v47 = vadd.f32 %v761_v40, %v756_v44  ;;  %v764_v58 = vadd.f32 %v762_v42, %v757_v23 }
 0x179   : > { %v770_v24 = vadd.f32 %v768_v45, %v763_v47  ;;  %v771_v26 = vadd.f32 %v769_v46, %v764_v58 }
 0x17b   : > { %v777_v50 = vadd.f32 %v775_v48, %v770_v24  ;;  %v778_v51 = vadd.f32 %v776_v49, %v771_v26 }
 0x17d   : > { %779 = vst [vmem:[%s363_s11] sm:$0xff] %v777_v50  ;;  %780 = vst [vmem:[%s363_s11 + $0x8] sm:$0xff] %v778_v51 }
 0x17e   : > { %1244 = shalt.err (!%p1241_p0)
}
 0x17f   : > { %s1245_s23 = scalar_lea.hbm %s1739_s13, 256  ;;  %s1249_s17 = scalar_lea.hbm %s1790_s7, 512 }
 0x180   : > { %p1246_p6 = scmp.ne.s32.totalorder %s1739_s13, %s1245_s23  ;;  %p1250_p8 = scmp.lt.u32.totalorder %s1739_s13, %s1790_s7 }
 0x181   : > { %p1251_p5 = scmp.lt.u32.totalorder %s1249_s17, %s1245_s23  ;;  %p1253_p7 = scmp.lt.u32.totalorder %s1245_s23, %s1739_s13 }
 0x182   : > { %p1247_p10 = pnand %p1246_p6, %p1809_p4 }
 0x183   : > { %p1252_p9 = por %p1251_p5, %p1250_p8 }
 0x184   : > { %p1248_p11 = pneg %p1247_p10 }
 0x185   : > { %p1254_p12 = por %p1253_p7, %p1252_p9 }
 0x187   : > { %p1255_p13 = pnand %p1254_p12, %p1248_p11 }
 0x189   : > { %1258 = shalt.err (!%p1255_p13)
}
 0x18a   : > { %962 = dma.vmem_to_hbm [thread:$0]  (%p1809_p4), %s1741_s29, 256, %s1739_s13, %s782_s22  }
 0x18b PF: > { %s808_s18 = sand.u32 1, %s1297_s24   ;;  %p1810_p1 = scmp.ne.s32.totalorder %s1800_s12, 0 }
 0x18c   : > { %p1811_p3 = scmp.ge.s32.totalorder %s1309_s27, 2  ;;  %s809_s20 = scalar_lea.sflag [#allocation4], %s808_s18 }
 0x18e   : > { %p985_p2 = pnand %p1811_p3, %p1810_p1 }
 0x190   : > { %1292 = dma.done.wait (!%p985_p2), %s809_s20, 256  }
 0x191   : > { %1294 = vsyncadd (!%p985_p2), %s809_s20, 4294967040  ;;  %p23_p0 = scmp.ge.s32.totalorder %s1528_s10, 4   ;;  %s1812_s24 = smov %s1301_s25 }
 0x192   : > { %s1813_s25 = smov %s1305_s26  ;;  %s1814_s26 = smov %s1540_s21 }
 0x193   : > { %s1815_s27 = smov %s1528_s10  ;;  %25 = sbr.rel (!%p23_p0) target bundleno = 8 (0x8), region = 131 }
 0x19a   :  { %814 = vsyncpa [#allocation3], 1 }
 0x19b   :  { %816 = vsyncpa [#allocation3 + $0x1], 1 }
 0x19c   :  { %817 = vsyncpa [#allocation6], 1 }
 0x19d   :  { %818 = vsyncpa [#allocation9], 1 }
 0x19e   :  { %819 = vsyncpa [#allocation12], 1 }
 0x19f   :  { %820 = vsyncpa [#allocation4], 1 }
 0x1a0   :  { %822 = vsyncpa [#allocation4 + $0x1], 1 }

</bundles_post_ra>
